<compile_context>
chip_gen: v5e
topology: v5e:2x2
jax: 0.10.0
libtpu: 0.0.40
codegen_flags: <defaults>
</compile_context>

<pallas_src>
import jax
import jax.numpy as jnp
from jax.experimental import pallas as pl
from jax.experimental.pallas import tpu as pltpu


def _identity_copy_kernel(x_ref, o_ref):
    # Pure copy: the whole "compute" of Identity is moving the tile through VMEM.
    o_ref[...] = x_ref[...]


def _lane_dense_2d(x):
    """Reshape to (R, C) with C a multiple of 128 when possible (lane-dense)."""
    if x.ndim == 0:
        return x.reshape(1, 1)
    n = x.size
    for c in (1024, 512, 256, 128):
        if n % c == 0:
            return x.reshape(n // c, c)
    # Fallback for awkward sizes: keep last dim on lanes.
    if x.ndim == 1:
        return x.reshape(1, -1)
    return x.reshape(-1, x.shape[-1])


# Tile cap: 2 MiB per tile -> (in + out) double-buffered ~= 8 MiB of VMEM,
# comfortably under every generation's scoped VMEM limit (incl. v5e's 16 MiB).
_MAX_TILE_BYTES = 2 * 1024 * 1024


def identity(x):
    """Identity forward pass via a pipelined Pallas copy (preserves shape & dtype)."""
    # TODO(synk): in real code simply `return x` — a copy kernel can never beat it.
    orig_shape = x.shape
    if x.size == 0:
        return x  # nothing to copy; avoid a degenerate grid

    x2 = _lane_dense_2d(x)
    R, C = x2.shape
    itemsize = jnp.dtype(x2.dtype).itemsize

    rows_per_tile = max(8, (_MAX_TILE_BYTES // max(1, C * itemsize)) // 8 * 8)
    tile_r = R if rows_per_tile >= R else rows_per_tile
    grid = (pl.cdiv(R, tile_r),)

    # Alias input buffer 0 -> output 0 when the flatten produced a fresh
    # temporary, so the kernel does not allocate a second HBM slab.
    io_aliases = {0: 0} if x2 is not x else {}

    out = pl.pallas_call(
        _identity_copy_kernel,
        out_shape=jax.ShapeDtypeStruct((R, C), x2.dtype),
        grid=grid,
        in_specs=[pl.BlockSpec((tile_r, C), lambda i: (i, 0))],
        out_specs=pl.BlockSpec((tile_r, C), lambda i: (i, 0)),
        input_output_aliases=io_aliases,
        compiler_params=pltpu.CompilerParams(
            dimension_semantics=("parallel",),      # lets v7x use both TCs
            vmem_limit_bytes=32 * 1024 * 1024,      # explicit, safe on v5e/v6e/v7x
        ),
    )(x2)
    return out.reshape(orig_shape)


if __name__ == "__main__":
    key = jax.random.PRNGKey(0)
    # Small NCHW-style input consistent with a typical module input.
    x = jax.random.normal(key, (2, 4, 16, 16), dtype=jnp.float32)
    y = identity(x)
    jax.block_until_ready(y)
    assert y.shape == x.shape and y.dtype == x.dtype
    assert bool(jnp.all(y == x))
    print("KERNEL_OK")
</pallas_src>

<mosaic_0001>
module attributes {stable_mosaic.version = 11 : i64} {
  func.func @_identity_copy_kernel(%arg0: i32, %arg1: memref<2x1024xf32, #tpu.memory_space<vmem>>, %arg2: memref<2x1024xf32, #tpu.memory_space<vmem>>) attributes {dimension_semantics = [#tpu.dimension_semantics<parallel>], iteration_bounds = array<i64: 1>, scalar_prefetch = 0 : i64, scratch_operands = 0 : i64, tpu.core_type = #tpu.core_type<tc>, window_params = [{transform_indices = @transform_0, window_bounds = array<i64: 2, 1024>}, {transform_indices = @transform_1, window_bounds = array<i64: 2, 1024>}]} {
    %c0 = arith.constant 0 : index
    %c0_0 = arith.constant 0 : index
    %0 = vector.load %arg1[%c0, %c0_0] : memref<2x1024xf32, #tpu.memory_space<vmem>>, vector<2x1024xf32>
    %c0_1 = arith.constant 0 : index
    %c0_2 = arith.constant 0 : index
    %1 = vector.load %arg2[%c0_1, %c0_2] : memref<2x1024xf32, #tpu.memory_space<vmem>>, vector<2x1024xf32>
    tpu.vector_store %arg2[%c0_1, %c0_2], %0 {strides = array<i32>} : memref<2x1024xf32, #tpu.memory_space<vmem>>, vector<2x1024xf32>,
    return
  }
  func.func @transform_0(%arg0: i32) -> (i32, i32) {
    %c0_i32 = arith.constant 0 : i32
    %c0_i32_0 = arith.constant 0 : i32
    return %arg0, %c0_i32 : i32, i32
  }
  func.func @transform_1(%arg0: i32) -> (i32, i32) {
    %c0_i32 = arith.constant 0 : i32
    %c0_i32_0 = arith.constant 0 : i32
    return %arg0, %c0_i32 : i32, i32
  }
}

</mosaic_0001>

<bundles_post_ra>
// kernel: tpu_custom_call.1
= control target key start
LH: loop header
LB: loop body
LE: loop exit
PB: predicated region body
PF: predicated region fallthrough
CT: control target
= control target key end

     0   :  { %6 = vsyncpa [#allocation3], 0  ;;  %s116_s0 = inlined_call_operand.hbm [shape: f32[2,1024], index: 0, kind: input, shape index: {}, may-alias: {0,1}]   ;;  %s117_s1 = inlined_call_operand.hbm [shape: f32[2,1024], index: 1, kind: output, shape index: {}, may-alias: {0,1}]  }
   0x1   :  { %7 = vsyncpa [#allocation4], 0  ;;  %s13_s8 = sshll.u32 %s116_s0, 4  ;;  %s98_s9 = smov [#allocation2]   ;;  %s14_s8 = int_to_ptr.hbm [resolvable:$true] %s13_s8 }
   0x2   :  { %s15_s10 = sshll.u32 %s98_s9, 4  ;;  %s16_s10 = int_to_ptr.vmem [resolvable:$true] %s15_s10 }
   0x3   :  { %18 = dma.hbm_to_vmem [thread:$0]  %s14_s8, 256, %s16_s10, [#allocation3]  }
   0x4   :  { %94 = dma.done.wait [#allocation3], 256  }
   0x5   :  { %95 = vsyncadd [#allocation3], 4294967040  ;;  %s99_s11 = smov [#allocation5]   ;;  %s34_s15 = sshll.u32 %s117_s1, 4  ;;  %v23_v0 = vld [vmem:[#allocation2] sm:$0xff]  ;;  %v24_v1 = vld [vmem:[#allocation2 + $0x8] sm:$0xff]  ;;  %s35_s15 = int_to_ptr.hbm [resolvable:$true] %s34_s15 }
   0x6   :  { %s32_s12 = sshll.u32 %s99_s11, 4  ;;  %25 = vst [vmem:[#allocation5] sm:$0xff] %v23_v0  ;;  %s33_s12 = int_to_ptr.vmem [resolvable:$true] %s32_s12 }
   0x7   :  { %26 = vst [vmem:[#allocation5 + $0x8] sm:$0xff] %v24_v1 }
   0x8   :  { %37 = dma.vmem_to_hbm [thread:$0]  %s33_s12, 256, %s35_s15, [#allocation4]  }
   0x9   :  { %96 = dma.done.wait [#allocation4], 256  }
   0xa   :  { %97 = vsyncadd [#allocation4], 4294967040 }
   0xb   :  { %42 = vsyncpa [#allocation3], 1 }
   0xc   :  { %43 = vsyncpa [#allocation4], 1 }

</bundles_post_ra>
